<compile_context>
chip_gen: v7x
topology: tpu7x:2x2x1
jax: 0.10.0
libtpu: 0.0.40
codegen_flags: <defaults>
</compile_context>

<pallas_src>
import functools

import jax
import jax.numpy as jnp
from jax.experimental import pallas as pl
from jax.experimental.pallas import tpu as pltpu

IGNORE_INDEX = -1
MAX_TILE_N = 131_072                     # lanes per grid step (upper bound)
_VMEM_INPUT_BUDGET = 12 * 1024 * 1024    # double-buffered input bytes target
_LANES = 128


def _recall_loss_kernel(x_ref, t_ref, tp_ref, sup_ref, ces_ref, *, n_total):
    """One N-tile: class-bucketed TP / support / cross-entropy partial sums."""
    i = pl.program_id(0)
    x = x_ref[...].astype(jnp.float32)           # (C, T) logits, class-major
    t = t_ref[...]                               # (1, T) int32 targets
    C, T = x.shape

    # Ragged tail handled in-kernel (no HBM pad copy): columns >= n_total hold
    # undefined data, so force them to ignore_index and zero their logits.
    col = jax.lax.broadcasted_iota(jnp.int32, (1, T), 1) + i * T
    inb = col < n_total
    t = jnp.where(inb, t, IGNORE_INDEX)
    x = jnp.where(inb, x, 0.0)

    cls = jax.lax.broadcasted_iota(jnp.int32, (C, T), 0)
    is_t = cls == t                              # (C, T); ignore rows are all-False

    # argmax over classes (first maximal index, like torch.argmax)
    xmax = jnp.max(x, axis=0, keepdims=True)                             # (1, T)
    pred = jnp.min(jnp.where(x == xmax, cls, C), axis=0, keepdims=True)  # (1, T)
    correct = pred == t                                                  # (1, T)

    one = jnp.float32(1.0)
    zero = jnp.float32(0.0)
    tp = jnp.sum(jnp.where(is_t & correct, one, zero), axis=1, keepdims=True)
    sup = jnp.sum(jnp.where(is_t, one, zero), axis=1, keepdims=True)

    # cross entropy (reduction='none'), bucketed into its target class in a
    # single select:  ce_n = lse_n - x[t_n, n]; ignored/padded samples give 0.
    lse = xmax + jnp.log(jnp.sum(jnp.exp(x - xmax), axis=0, keepdims=True))  # (1, T)
    ces = jnp.sum(jnp.where(is_t, lse - x, zero), axis=1, keepdims=True)     # (C, 1)

    # TODO(synk): pack floor(8/C) N-chunks along sublanes (kernel sees (k*C, T))
    # to fill f32 vregs on v6e/v7x, and/or offload the bucketed sums to the idle
    # MXU (is_t @ [correct, 1, ce]) once a bundle dump confirms VPU-bound.
    tp_ref[...] = jnp.broadcast_to(tp, (C, _LANES))
    sup_ref[...] = jnp.broadcast_to(sup, (C, _LANES))
    ces_ref[...] = jnp.broadcast_to(ces, (C, _LANES))


def recall_loss_class_major(x_cn: jax.Array, target: jax.Array, *,
                            max_tile_n: int = MAX_TILE_N) -> jax.Array:
    """RecallLoss from class-major logits x_cn: (C, N); target: (N,), ignore=-1."""
    C, N = x_cn.shape
    t2d = target.astype(jnp.int32).reshape(1, N)

    # lane-dense tile over N: multiple of 128, capped by VMEM budget.
    bytes_per_col = C * x_cn.dtype.itemsize + 4
    vmem_cap = _VMEM_INPUT_BUDGET // (2 * bytes_per_col)
    tile = min(max_tile_n, vmem_cap, ((N + _LANES - 1) // _LANES) * _LANES)
    tile = max(_LANES, (tile // _LANES) * _LANES)
    n_steps = pl.cdiv(N, tile)

    kernel = functools.partial(_recall_loss_kernel, n_total=N)
    part_shape = jax.ShapeDtypeStruct((C, n_steps * _LANES), jnp.float32)

    tp_p, sup_p, ces_p = pl.pallas_call(
        kernel,
        out_shape=(part_shape, part_shape, part_shape),
        grid_spec=pltpu.PrefetchScalarGridSpec(
            num_scalar_prefetch=0,
            grid=(n_steps,),
            in_specs=[
                pl.BlockSpec((C, tile), lambda i: (0, i)),
                pl.BlockSpec((1, tile), lambda i: (0, i)),
            ],
            out_specs=[pl.BlockSpec((C, _LANES), lambda i: (0, i))
                       for _ in range(3)],
        ),
        compiler_params=pltpu.CompilerParams(
            # independent per-step partials -> megacore-splittable on v7x
            dimension_semantics=("parallel",),
            vmem_limit_bytes=48 * 1024 * 1024,
        ),
    )(x_cn, t2d)

    # Tiny epilogue in plain JAX (lane 0 of each per-step block holds the value).
    def _collapse(p):
        return p.reshape(C, n_steps, _LANES)[:, :, 0].sum(axis=1)

    tp, sup, ces = _collapse(tp_p), _collapse(sup_p), _collapse(ces_p)
    recall = jnp.where(sup > 0, tp / jnp.maximum(sup, 1.0), 0.0)
    weight = 1.0 - recall                        # per-class (1 - recall)
    # sum_n w[t_n]*ce_n == sum_c w_c * (sum_{n: t_n=c} ce_n); mean over all N.
    # TODO(synk): for N >~ 16M widen the ce_sum accumulation if exact parity
    # with a float64 reference matters.
    return jnp.sum(weight * ces) / jnp.float32(N)


def recall_loss(x: jax.Array, target: jax.Array, *,
                max_tile_n: int = MAX_TILE_N) -> jax.Array:
    """x: (N, C) float logits (torch layout); target: (N,) int, ignore_index=-1.

    Performs exactly one layout transform (class-major transpose, no pad).
    Callers that can produce class-major (C, N) logits upstream should call
    recall_loss_class_major directly and skip even that.
    """
    return recall_loss_class_major(jnp.transpose(x), target, max_tile_n=max_tile_n)


def recall_loss_ref(x, t):
    """Pure-JAX reference replicating the PyTorch module semantics."""
    N, C = x.shape
    valid = t != IGNORE_INDEX
    pred = jnp.argmax(x, axis=1)
    tp = jnp.array([jnp.sum((pred == c) & (t == c) & valid) for c in range(C)],
                   dtype=jnp.float32)
    sup = jnp.array([jnp.sum((t == c) & valid) for c in range(C)],
                    dtype=jnp.float32)
    recall = jnp.where(sup > 0, tp / jnp.maximum(sup, 1.0), 0.0)
    weight = 1.0 - recall
    logp = jax.nn.log_softmax(x, axis=1)
    t_safe = jnp.where(valid, t, 0)
    ce = -logp[jnp.arange(N), t_safe] * valid
    w_t = weight[t]  # t == -1 indexes the last class, as in torch; ce there is 0
    return jnp.mean(w_t * ce)


if __name__ == "__main__":
    key = jax.random.PRNGKey(0)
    kx, kt, kx2, kt2 = jax.random.split(key, 4)

    # small case: single grid step, ragged (N=16 < 128 lanes), includes ignore_index
    N, C = 16, 4
    x = jax.random.normal(kx, (N, C), dtype=jnp.float32)
    target = jax.random.randint(kt, (N,), -1, C, dtype=jnp.int32)
    out = jax.block_until_ready(recall_loss(x, target))
    ref = recall_loss_ref(x, target)
    assert jnp.allclose(out, ref, atol=1e-5, rtol=1e-4), (out, ref)

    # multi-tile case: 3 grid steps with a ragged tail (exercises in-kernel
    # tail masking and the per-step partial outputs / outside epilogue)
    N2, C2 = 300, 5
    x2 = jax.random.normal(kx2, (N2, C2), dtype=jnp.float32)
    target2 = jax.random.randint(kt2, (N2,), -1, C2, dtype=jnp.int32)
    out2 = jax.block_until_ready(recall_loss(x2, target2, max_tile_n=128))
    ref2 = recall_loss_ref(x2, target2)
    assert jnp.allclose(out2, ref2, atol=1e-5, rtol=1e-4), (out2, ref2)

    print("KERNEL_OK")
</pallas_src>

<mosaic_0001>
module attributes {stable_mosaic.version = 11 : i64} {
  func.func @_recall_loss_kernel(%arg0: i32, %arg1: memref<4x128xf32, #tpu.memory_space<vmem>>, %arg2: memref<1x128xi32, #tpu.memory_space<vmem>>, %arg3: memref<4x128xf32, #tpu.memory_space<vmem>>, %arg4: memref<4x128xf32, #tpu.memory_space<vmem>>, %arg5: memref<4x128xf32, #tpu.memory_space<vmem>>) attributes {dimension_semantics = [#tpu.dimension_semantics<parallel>], iteration_bounds = array<i64: 1>, scalar_prefetch = 0 : i64, scratch_operands = 0 : i64, tpu.core_type = #tpu.core_type<tc>, window_params = [{transform_indices = @transform_0, window_bounds = array<i64: 4, 128>}, {transform_indices = @transform_1, window_bounds = array<i64: 1, 128>}, {transform_indices = @transform_2, window_bounds = array<i64: 4, 128>}, {transform_indices = @transform_3, window_bounds = array<i64: 4, 128>}, {transform_indices = @transform_4, window_bounds = array<i64: 4, 128>}]} {
    %c0 = arith.constant 0 : index
    %c0_0 = arith.constant 0 : index
    %0 = vector.load %arg1[%c0, %c0_0] : memref<4x128xf32, #tpu.memory_space<vmem>>, vector<4x128xf32>
    %c0_1 = arith.constant 0 : index
    %c0_2 = arith.constant 0 : index
    %1 = vector.load %arg2[%c0_1, %c0_2] : memref<1x128xi32, #tpu.memory_space<vmem>>, vector<1x128xi32>
    %2 = tpu.iota {dimensions = array<i32: 1>} : vector<1x128xi32>
    %c128_i32 = arith.constant 128 : i32
    %3 = arith.muli %arg0, %c128_i32 : i32
    %4 = vector.broadcast %3 : i32 to vector<1x128xi32>
    %5 = arith.addi %2, %4 : vector<1x128xi32>
    %c16_i32 = arith.constant 16 : i32
    %6 = vector.broadcast %c16_i32 : i32 to vector<1x128xi32>
    %7 = arith.cmpi slt, %5, %6 : vector<1x128xi32>
    %c-1_i32 = arith.constant -1 : i32
    %8 = vector.broadcast %c-1_i32 : i32 to vector<1x128xi32>
    %9 = arith.select %7, %1, %8 : vector<1x128xi1>, vector<1x128xi32>
    %cst = arith.constant 0.000000e+00 : f32
    %10 = vector.shape_cast %7 : vector<1x128xi1> to vector<1x128xi1>
    %11 = vector.broadcast %10 : vector<1x128xi1> to vector<4x128xi1>
    %12 = vector.broadcast %cst : f32 to vector<4x128xf32>
    %13 = arith.select %11, %0, %12 : vector<4x128xi1>, vector<4x128xf32>
    %14 = tpu.iota {dimensions = array<i32: 0>} : vector<4x128xi32>
    %15 = vector.broadcast %9 : vector<1x128xi32> to vector<4x128xi32>
    %16 = arith.cmpi eq, %14, %15 : vector<4x128xi32>
    %cst_3 = arith.constant dense<0xFF800000> : vector<128xf32>
    %17 = vector.multi_reduction <maximumf>, %13, %cst_3 [0] : vector<4x128xf32> to vector<128xf32>
    %18 = vector.shape_cast %17 : vector<128xf32> to vector<1x128xf32>
    %19 = vector.broadcast %18 : vector<1x128xf32> to vector<4x128xf32>
    %20 = arith.cmpf oeq, %13, %19 : vector<4x128xf32>
    %c4_i32 = arith.constant 4 : i32
    %21 = vector.broadcast %c4_i32 : i32 to vector<4x128xi32>
    %22 = arith.select %20, %14, %21 : vector<4x128xi1>, vector<4x128xi32>
    %cst_4 = arith.constant dense<2147483647> : vector<128xi32>
    %23 = vector.multi_reduction <minsi>, %22, %cst_4 [0] : vector<4x128xi32> to vector<128xi32>
    %24 = vector.shape_cast %23 : vector<128xi32> to vector<1x128xi32>
    %25 = arith.cmpi eq, %24, %9 : vector<1x128xi32>
    %26 = vector.broadcast %25 : vector<1x128xi1> to vector<4x128xi1>
    %27 = arith.andi %16, %26 : vector<4x128xi1>
    %cst_5 = arith.constant 1.000000e+00 : f32
    %cst_6 = arith.constant 0.000000e+00 : f32
    %28 = vector.broadcast %cst_5 : f32 to vector<4x128xf32>
    %29 = vector.broadcast %cst_6 : f32 to vector<4x128xf32>
    %30 = arith.select %27, %28, %29 : vector<4x128xi1>, vector<4x128xf32>
    %cst_7 = arith.constant dense<0.000000e+00> : vector<4xf32>
    %31 = vector.multi_reduction <add>, %30, %cst_7 [1] : vector<4x128xf32> to vector<4xf32>
    %32 = vector.shape_cast %31 : vector<4xf32> to vector<4x1xf32>
    %cst_8 = arith.constant 1.000000e+00 : f32
    %cst_9 = arith.constant 0.000000e+00 : f32
    %33 = vector.broadcast %cst_8 : f32 to vector<4x128xf32>
    %34 = vector.broadcast %cst_9 : f32 to vector<4x128xf32>
    %35 = arith.select %16, %33, %34 : vector<4x128xi1>, vector<4x128xf32>
    %cst_10 = arith.constant dense<0.000000e+00> : vector<4xf32>
    %36 = vector.multi_reduction <add>, %35, %cst_10 [1] : vector<4x128xf32> to vector<4xf32>
    %37 = vector.shape_cast %36 : vector<4xf32> to vector<4x1xf32>
    %38 = vector.broadcast %18 : vector<1x128xf32> to vector<4x128xf32>
    %39 = arith.subf %13, %38 : vector<4x128xf32>
    %40 = math.exp %39 : vector<4x128xf32>
    %cst_11 = arith.constant dense<0.000000e+00> : vector<128xf32>
    %41 = vector.multi_reduction <add>, %40, %cst_11 [0] : vector<4x128xf32> to vector<128xf32>
    %42 = vector.shape_cast %41 : vector<128xf32> to vector<1x128xf32>
    %43 = math.log %42 : vector<1x128xf32>
    %44 = arith.addf %18, %43 : vector<1x128xf32>
    %45 = vector.broadcast %44 : vector<1x128xf32> to vector<4x128xf32>
    %46 = arith.subf %45, %13 : vector<4x128xf32>
    %cst_12 = arith.constant 0.000000e+00 : f32
    %47 = vector.broadcast %cst_12 : f32 to vector<4x128xf32>
    %48 = arith.select %16, %46, %47 : vector<4x128xi1>, vector<4x128xf32>
    %cst_13 = arith.constant dense<0.000000e+00> : vector<4xf32>
    %49 = vector.multi_reduction <add>, %48, %cst_13 [1] : vector<4x128xf32> to vector<4xf32>
    %50 = vector.shape_cast %49 : vector<4xf32> to vector<4x1xf32>
    %51 = vector.shape_cast %32 : vector<4x1xf32> to vector<4x1xf32>
    %52 = vector.broadcast %51 : vector<4x1xf32> to vector<4x128xf32>
    %c0_14 = arith.constant 0 : index
    %c0_15 = arith.constant 0 : index
    %53 = vector.load %arg3[%c0_14, %c0_15] : memref<4x128xf32, #tpu.memory_space<vmem>>, vector<4x128xf32>
    tpu.vector_store %arg3[%c0_14, %c0_15], %52 {strides = array<i32>} : memref<4x128xf32, #tpu.memory_space<vmem>>, vector<4x128xf32>,
    %54 = vector.shape_cast %37 : vector<4x1xf32> to vector<4x1xf32>
    %55 = vector.broadcast %54 : vector<4x1xf32> to vector<4x128xf32>
    %c0_16 = arith.constant 0 : index
    %c0_17 = arith.constant 0 : index
    %56 = vector.load %arg4[%c0_16, %c0_17] : memref<4x128xf32, #tpu.memory_space<vmem>>, vector<4x128xf32>
    tpu.vector_store %arg4[%c0_16, %c0_17], %55 {strides = array<i32>} : memref<4x128xf32, #tpu.memory_space<vmem>>, vector<4x128xf32>,
    %57 = vector.shape_cast %50 : vector<4x1xf32> to vector<4x1xf32>
    %58 = vector.broadcast %57 : vector<4x1xf32> to vector<4x128xf32>
    %c0_18 = arith.constant 0 : index
    %c0_19 = arith.constant 0 : index
    %59 = vector.load %arg5[%c0_18, %c0_19] : memref<4x128xf32, #tpu.memory_space<vmem>>, vector<4x128xf32>
    tpu.vector_store %arg5[%c0_18, %c0_19], %58 {strides = array<i32>} : memref<4x128xf32, #tpu.memory_space<vmem>>, vector<4x128xf32>,
    return
  }
  func.func @transform_0(%arg0: i32) -> (i32, i32) {
    %c0_i32 = arith.constant 0 : i32
    %c0_i32_0 = arith.constant 0 : i32
    return %c0_i32, %arg0 : i32, i32
  }
  func.func @transform_1(%arg0: i32) -> (i32, i32) {
    %c0_i32 = arith.constant 0 : i32
    %c0_i32_0 = arith.constant 0 : i32
    return %c0_i32, %arg0 : i32, i32
  }
  func.func @transform_2(%arg0: i32) -> (i32, i32) {
    %c0_i32 = arith.constant 0 : i32
    %c0_i32_0 = arith.constant 0 : i32
    return %c0_i32, %arg0 : i32, i32
  }
  func.func @transform_3(%arg0: i32) -> (i32, i32) {
    %c0_i32 = arith.constant 0 : i32
    %c0_i32_0 = arith.constant 0 : i32
    return %c0_i32, %arg0 : i32, i32
  }
  func.func @transform_4(%arg0: i32) -> (i32, i32) {
    %c0_i32 = arith.constant 0 : i32
    %c0_i32_0 = arith.constant 0 : i32
    return %c0_i32, %arg0 : i32, i32
  }
}

</mosaic_0001>

<bundles_post_ra>
// kernel: tpu_custom_call.1
= control target key start
LH: loop header
LB: loop body
LE: loop exit
PB: predicated region body
PF: predicated region fallthrough
CT: control target
= control target key end

     0   :  { %10 = vsyncpa [#allocation3], 0  ;;  %s341_s0 = inlined_call_operand.hbm [shape: f32[4,16], index: 0, kind: input, shape index: {}]   ;;  %s342_s1 = inlined_call_operand.vmem [shape: s32[1,16], index: 1, kind: input, shape index: {}]   ;;  %s343_s2 = inlined_call_operand.hbm [shape: f32[4,128], index: 2, kind: output, shape index: {0}]   ;;  %s344_s3 = inlined_call_operand.hbm [shape: f32[4,128], index: 3, kind: output, shape index: {1}]   ;;  %s345_s4 = inlined_call_operand.hbm [shape: f32[4,128], index: 4, kind: output, shape index: {2}]  }
   0x1   :  { %11 = vsyncpa [#allocation4], 0 }
   0x2   :  { %12 = vsyncpa [#allocation7], 0  ;;  %s250_s15 = smov [#allocation2]   ;;  %s156_s19 = scalar_lea.hbm %s341_s0, 64 }
   0x3   :  { %s19_s16 = sshll.u32 %s250_s15, 4  ;;  %p157_p0 = scmp.ne.s32.totalorder %s341_s0, %s156_s19  ;;  %s20_s16 = int_to_ptr.vmem [resolvable:$true] %s19_s16 }
   0x4   :  { %p160_p1 = scmp.lt.u32.totalorder %s156_s19, %s341_s0 }
   0x6   :  { %p162_p2 = pnand %p160_p1, %p157_p0 }
   0x8   :  { %165 = shalt.err (!%p162_p2)
}
   0x9   :  { %s166_s24 = scalar_lea.vmem %s20_s16, 64  ;;  %p171_p4 = scmp.lt.s32.totalorder %s20_s16, %s20_s16 }
   0xa   :  { %p167_p3 = scmp.ne.s32.totalorder %s20_s16, %s166_s24  ;;  %p172_p5 = scmp.lt.s32.totalorder %s166_s24, %s166_s24 }
   0xc   :  { %p173_p6 = por %p172_p5, %p171_p4 }
   0xe   :  { %p174_p7 = pnand %p173_p6, %p167_p3 }
  0x10   :  { %177 = shalt.err (!%p174_p7)
}
  0x11   :  { %22 = dma.hbm_to_vmem [thread:$0]  %s341_s0, 64, %s20_s16, [#allocation3]  }
  0x12   :  { %244 = dma.done.wait [#allocation3], 64  }
  0x13   :  { %245 = vsyncadd [#allocation3], 4294967232  ;;  %v30_v0 = vlaneseq  ;;  %vm47_vm1 = vcmask 1043456   ;;  %v29_v4 = vld [vmem:[%s342_s1] sm:$0x1]  ;;  %v251_v11 = vmov 0.0  }
  0x14   :  { %v28_v5 = vld [vmem:[#allocation2] sm:$0xf]  ;;  %v252_v32 = vmov 0   ;;  %s253_s0 = smov [#allocation6]  }
  0x15   :  { %v31_v1 = vand.u32 127, %v30_v0  ;;  %v41_v2 = vshrl.u32 %v30_v0, 7  ;;  %s120_s1 = sshll.u32 %s253_s0, 4  ;;  %s121_s1 = int_to_ptr.vmem [resolvable:$true] %s120_s1 }
  0x16   :  { %s178_s29 = scalar_lea.vmem %s121_s1, 64  ;;  %p183_p9 = scmp.lt.s32.totalorder %s121_s1, %s121_s1 }
  0x17   :  { %vm35_vm0 = vcmp.lt.s32.totalorder %v31_v1, 16  ;;  %v44_v3 = vsub.s32 0, %v41_v2  ;;  %p179_p8 = scmp.ne.s32.totalorder %s121_s1, %s178_s29  ;;  %p184_p10 = scmp.lt.s32.totalorder %s178_s29, %s178_s29 }
  0x18   :  { %v36_v6 = vsel %vm35_vm0, %v29_v4, 4294967295  ;;  %v39_v7 = vsel %vm35_vm0, %v28_v5, 0.0 }
  0x19   :  { %v45_v8 = vrot.slane %v36_v6, %v44_v3  ;;  %v48_v9 = vsel %vm47_vm1, %v39_v7, -inf  ;;  %p185_p11 = por %p184_p10, %p183_p9 }
  0x1a   :  { %v49_v10 = vrot.slane %v48_v9, 4 }
  0x1b   :  { %vm46_vm2 = vcmp.eq.s32.totalorder %v41_v2, %v45_v8  ;;  %p186_p12 = pnand %p185_p11, %p179_p8 }
  0x1c   :  { %v79_v12 = vsel %vm46_vm2, 1.0, %v251_v11  ;;  %v50_v13 = vmax.f32 %v48_v9, %v49_v10 }
  0x1d   :  { %v80_v14 = vsel %vm47_vm1, %v79_v12, 0.0 }
  0x1e   :  { %81 = vadd.xlane.f32.xlu0 %v80_v14  ;;  %v51_v15 = vrot.slane %v50_v13, 2 }
  0x20   :  { %v52_v16 = vmax.f32 %v50_v13, %v51_v15 }
  0x22   :  { %v53_v17 = vrot.slane %v52_v16, 1 }
  0x24   :  { %v54_v18 = vmax.f32 %v52_v16, %v53_v17 }
  0x26   :  { %v83_v19 = vsub.f32 %v39_v7, %v54_v18  ;;  %vm55_vm3 = vcmp.eq.f32.partialorder %v39_v7, %v54_v18 }
  0x27   :  { %v56_v20 = vsel %vm55_vm3, %v41_v2, 4 }
  0x28   :  { %v84_v21 = vmul.f32 1.442695, %v83_v19  ;;  %v57_v22 = vsel %vm47_vm1, %v56_v20, 2147483647 }
  0x29   :  { %v58_v23 = vrot.slane %v57_v22, 4 }
  0x2a   :  { %152 = vpow2.f32 %v84_v21 }
  0x2b   :  { %vm59_vm4 = vcmp.lt.s32.totalorder %v57_v22, %v58_v23 }
  0x2c   :  { %v60_v24 = vsel %vm59_vm4, %v57_v22, %v58_v23 }
  0x2d   :  { %v61_v25 = vrot.slane %v60_v24, 2 }
  0x2f   :  { %vm62_vm5 = vcmp.lt.s32.totalorder %v60_v24, %v61_v25 }
  0x30   :  { %v63_v26 = vsel %vm62_vm5, %v60_v24, %v61_v25 }
  0x31   :  { %v64_v27 = vrot.slane %v63_v26, 1 }
  0x33   :  { %vm65_vm6 = vcmp.lt.s32.totalorder %v63_v26, %v64_v27 }
  0x34   :  { %v153_v28 = vpop.eup %152  ;;  %v66_v29 = vsel %vm65_vm6, %v63_v26, %v64_v27 }
  0x35   :  { %v86_v30 = vsel %vm47_vm1, %v153_v28, 0.0  ;;  %vm67_vm7 = vcmp.eq.s32.totalorder %v66_v29, %v36_v6 }
  0x36   :  { %v87_v31 = vrot.slane %v86_v30, 4  ;;  %v68_v33 = vsel %vm67_vm7, 1, %v252_v32 }
  0x37   :  { %v72_v34 = vrot.slane %v68_v33, %v44_v3 }
  0x38   :  { %v88_v35 = vadd.f32 %v87_v31, %v86_v30 }
  0x39   :  { %vm73_vm8 = vcmp.eq.s32.totalorder %v72_v34, 1 }
  0x3a   :  { %v89_v36 = vrot.slane %v88_v35, 2  ;;  %vm74_vm9 = vmand %vm46_vm2, %vm73_vm8 }
  0x3b   :  { %v75_v37 = vsel %vm74_vm9, 1.0, %v251_v11 }
  0x3c   :  { %v90_v38 = vadd.f32 %v89_v36, %v88_v35  ;;  %v76_v39 = vsel %vm47_vm1, %v75_v37, 0.0 }
  0x3d   :  { %77 = vadd.xlane.f32.xlu0 %v76_v39 }
  0x3e   :  { %v91_v40 = vrot.slane %v90_v38, 1 }
  0x40   :  { %v92_v41 = vadd.f32 %v91_v40, %v90_v38 }
  0x42   :  { %154 = vlog2.f32 %v92_v41 }
  0x4c   :  { %v155_v42 = vpop.eup %154 }
  0x4d   :  { %v94_v43 = vmul.f32 0.6931472, %v155_v42 }
  0x4f   :  { %v95_v44 = vadd.f32 %v94_v43, %v54_v18 }
  0x51   :  { %v96_v45 = vsub.f32 %v95_v44, %v39_v7 }
  0x53   :  { %v97_v46 = vsel %vm46_vm2, %v96_v45, 0.0 }
  0x54   :  { %v98_v47 = vsel %vm47_vm1, %v97_v46, 0.0 }
  0x55   :  { %99 = vadd.xlane.f32.xlu1 %v98_v47 }
  0xab   :  { %v82_v48 = vpop.xlane.xlu0 %81 }
  0xac   :  { %102 = vst [vmem:[#allocation6] sm:$0xf] %v82_v48 }
  0xad   :  { %189 = shalt.err (!%p186_p12)
}
  0xae   :  { %s190_s6 = scalar_lea.hbm %s344_s3, 64 }
  0xaf   :  { %p191_p13 = scmp.ne.s32.totalorder %s344_s3, %s190_s6  ;;  %p194_p0 = scmp.lt.u32.totalorder %s190_s6, %s344_s3 }
  0xb1   :  { %p196_p1 = pnand %p194_p0, %p191_p13 }
  0xb3   :  { %199 = shalt.err (!%p196_p1)
}
  0xb4   :  { %123 = dma.vmem_to_hbm [thread:$0]  %s121_s1, 64, %s344_s3, [#allocation7]  }
  0xb5   :  { %s254_s13 = smov [#allocation5]  }
  0xb6   :  { %s110_s14 = sshll.u32 %s254_s13, 4  ;;  %s111_s14 = int_to_ptr.vmem [resolvable:$true] %s110_s14 }
  0xb7   :  { %s200_s15 = scalar_lea.vmem %s111_s14, 64  ;;  %p205_p3 = scmp.lt.s32.totalorder %s111_s14, %s111_s14 }
  0xb8   :  { %p201_p2 = scmp.ne.s32.totalorder %s111_s14, %s200_s15  ;;  %p206_p4 = scmp.lt.s32.totalorder %s200_s15, %s200_s15 }
  0xba   :  { %p207_p5 = por %p206_p4, %p205_p3 }
  0xbc   :  { %p208_p6 = pnand %p207_p5, %p201_p2 }
  0xca   :  { %v78_v49 = vpop.xlane.xlu0 %77 }
  0xcb   :  { %101 = vst [vmem:[#allocation5] sm:$0xf] %v78_v49 }
  0xcc   :  { %211 = shalt.err (!%p208_p6)
}
  0xcd   :  { %s212_s18 = scalar_lea.hbm %s343_s2, 64 }
  0xce   :  { %p213_p7 = scmp.ne.s32.totalorder %s343_s2, %s212_s18  ;;  %p216_p8 = scmp.lt.u32.totalorder %s212_s18, %s343_s2 }
  0xd0   :  { %p218_p9 = pnand %p216_p8, %p213_p7 }
  0xd2   :  { %221 = shalt.err (!%p218_p9)
}
  0xd3   :  { %113 = dma.vmem_to_hbm [thread:$0]  %s111_s14, 64, %s343_s2, [#allocation4]  }
  0xd4   :  { %s255_s24 = smov [#allocation8]  }
  0xd5   :  { %s130_s25 = sshll.u32 %s255_s24, 4  ;;  %s131_s25 = int_to_ptr.vmem [resolvable:$true] %s130_s25 }
  0xd6   :  { %s222_s26 = scalar_lea.vmem %s131_s25, 64  ;;  %p227_p11 = scmp.lt.s32.totalorder %s131_s25, %s131_s25 }
  0xd7   :  { %p223_p10 = scmp.ne.s32.totalorder %s131_s25, %s222_s26  ;;  %p228_p12 = scmp.lt.s32.totalorder %s222_s26, %s222_s26 }
  0xd9   :  { %p229_p13 = por %p228_p12, %p227_p11 }
  0xdb   :  { %p230_p0 = pnand %p229_p13, %p223_p10 }
  0xe2   :  { %v100_v50 = vpop.xlane.xlu1 %99 }
  0xe3   :  { %103 = vst [vmem:[#allocation8] sm:$0xf] %v100_v50 }
  0xe4   :  { %233 = shalt.err (!%p230_p0)
}
  0xe5   :  { %s234_s0 = scalar_lea.hbm %s345_s4, 64 }
  0xe6   :  { %p235_p1 = scmp.ne.s32.totalorder %s345_s4, %s234_s0  ;;  %p238_p2 = scmp.lt.u32.totalorder %s234_s0, %s345_s4 }
  0xe8   :  { %p240_p3 = pnand %p238_p2, %p235_p1 }
  0xea   :  { %243 = shalt.err (!%p240_p3)
}
  0xeb   :  { %133 = dma.vmem_to_hbm [thread:$0]  %s131_s25, 64, %s345_s4, [#allocation7]  }
  0xec   :  { %246 = dma.done.wait [#allocation4], 64  }
  0xed   :  { %247 = vsyncadd [#allocation4], 4294967232 }
  0xee   :  { %248 = dma.done.wait [#allocation7], 128  }
  0xef   :  { %249 = vsyncadd [#allocation7], 4294967168 }
  0xf0   :  { %143 = vsyncpa [#allocation3], 1 }
  0xf1   :  { %144 = vsyncpa [#allocation4], 1 }
  0xf2   :  { %145 = vsyncpa [#allocation7], 1 }

</bundles_post_ra>
